<compile_context>
chip_gen: v7x
topology: tpu7x:2x2x1
jax: 0.10.0
libtpu: 0.0.40
codegen_flags: <defaults>
</compile_context>

<pallas_src>
import functools

import jax
import jax.numpy as jnp
from jax import lax
from jax.experimental import pallas as pl
from jax.experimental.pallas import tpu as pltpu

FLOW_DIV = 20.0
END_LEVEL = "level2"
NEG_SLOPE = 0.1


def _leaky(x):
    return jnp.where(x >= 0, x, NEG_SLOPE * x)


# ----------------------------------------------------------------------------
# GEMM kernel (bias + optional LeakyReLU fused)
# ----------------------------------------------------------------------------
def _gemm_kernel(a_ref, b_ref, bias_ref, o_ref, *, act):
    acc = jnp.dot(a_ref[...], b_ref[...], preferred_element_type=jnp.float32)
    acc = acc + bias_ref[...]
    if act:
        acc = _leaky(acc)
    o_ref[...] = acc


def pallas_gemm(a, b, bias=None, *, act=False, compute_dtype=jnp.bfloat16):
    """(M,K) @ (K,N) + bias[N] on the MXU.  No HBM padding of A: M<=512 is a single
    full-array block; larger M uses 512-row tiles with a ragged last tile."""
    M, K = a.shape
    Nc = b.shape[1]
    a = a.astype(compute_dtype)
    b = b.astype(compute_dtype)
    if bias is None:
        bias = jnp.zeros((Nc,), jnp.float32)
    bias2 = bias.reshape(1, Nc).astype(jnp.float32)

    TM = 512
    if M <= TM:
        bm, grid = M, (1,)                       # block == full array, no padding
    else:
        bm, grid = TM, ((M + TM - 1) // TM,)     # overhang rows are dropped on store

    return pl.pallas_call(
        functools.partial(_gemm_kernel, act=act),
        out_shape=jax.ShapeDtypeStruct((M, Nc), jnp.float32),
        grid=grid,
        in_specs=[
            pl.BlockSpec((bm, K), lambda i: (i, 0)),
            pl.BlockSpec((K, Nc), lambda i: (0, 0)),
            pl.BlockSpec((1, Nc), lambda i: (0, 0)),
        ],
        out_specs=pl.BlockSpec((bm, Nc), lambda i: (i, 0)),
        compiler_params=pltpu.CompilerParams(dimension_semantics=("parallel",)),
    )(a, b, bias2)


# ----------------------------------------------------------------------------
# Fused stride-1 3x3 conv kernel: in-kernel im2col (no 9x HBM expansion)
# ----------------------------------------------------------------------------
def _conv_s1_kernel(x_ref, w_ref, b_ref, o_ref, *, k, act):
    # x_ref: (1, Hp, Wp, C) f32 (ring-padded image), w_ref: (k*k*C, cout) bf16,
    # b_ref: (1, cout) f32, o_ref: (1, Ho, Wo, cout) f32.
    Ho = o_ref.shape[1]
    Wo = o_ref.shape[2]
    w = w_ref[...]
    bias = b_ref[...]
    for y in range(Ho):
        pieces = []
        for di in range(k):
            for dj in range(k):
                pieces.append(x_ref[0, y + di, dj:dj + Wo, :])      # (Wo, C)
        row_patch = jnp.concatenate(pieces, axis=-1).astype(jnp.bfloat16)  # (Wo, k*k*C)
        acc = jnp.dot(row_patch, w, preferred_element_type=jnp.float32) + bias
        if act:
            acc = _leaky(acc)
        o_ref[0, y] = acc


def conv2d_s1(x, w, b, *, act=True):
    """Stride-1 'same' conv, NHWC.  Input is ring-padded once; the k*k shifted
    windows are generated inside the kernel."""
    N, H, W, C = x.shape
    k = w.shape[0]
    p = k // 2
    cout = w.shape[-1]
    xp = jnp.pad(x.astype(jnp.float32), ((0, 0), (p, p), (p, p), (0, 0)))
    Hp, Wp = H + 2 * p, W + 2 * p
    return pl.pallas_call(
        functools.partial(_conv_s1_kernel, k=k, act=act),
        out_shape=jax.ShapeDtypeStruct((N, H, W, cout), jnp.float32),
        grid=(N,),
        in_specs=[
            pl.BlockSpec((1, Hp, Wp, C), lambda n: (n, 0, 0, 0)),
            pl.BlockSpec((k * k * C, cout), lambda n: (0, 0)),
            pl.BlockSpec((1, cout), lambda n: (0, 0)),
        ],
        out_specs=pl.BlockSpec((1, H, W, cout), lambda n: (n, 0, 0, 0)),
        compiler_params=pltpu.CompilerParams(dimension_semantics=("parallel",)),
    )(xp, w.reshape(k * k * C, cout).astype(jnp.bfloat16),
      b.reshape(1, cout).astype(jnp.float32))


# ----------------------------------------------------------------------------
# Stride-2 conv: im2col on the 2x-downsampled lattice + batched GEMM
# ----------------------------------------------------------------------------
def im2col(x, k, stride, pad):
    N, H, W, C = x.shape
    xp = jnp.pad(x, ((0, 0), (pad, pad), (pad, pad), (0, 0)))
    Ho = (H + 2 * pad - k) // stride + 1
    Wo = (W + 2 * pad - k) // stride + 1
    cols = []
    for di in range(k):
        for dj in range(k):
            cols.append(xp[:, di:di + Ho * stride:stride, dj:dj + Wo * stride:stride, :])
    return jnp.concatenate(cols, axis=-1), Ho, Wo


def conv2d_s2(x, w, b):
    # TODO(synk): fuse the stride-2 im2col into the kernel too (needs strided
    # in-kernel window reads); expansion here is only ~2.25x of the input.
    k = w.shape[0]
    patches, Ho, Wo = im2col(x, k, 2, k // 2)
    N = x.shape[0]
    K = patches.shape[-1]
    cout = w.shape[-1]
    out = pallas_gemm(patches.reshape(N * Ho * Wo, K), w.reshape(K, cout), b, act=True)
    return out.reshape(N, Ho, Wo, cout)


# ----------------------------------------------------------------------------
# Correlation (cost volume): f2 padded once, 9 displacements generated in-kernel
# ----------------------------------------------------------------------------
def _corr_kernel(f1_ref, f2p_ref, o_ref, *, md, inv_c):
    f1 = f1_ref[0]                            # (H, W, C)
    H, W = f1.shape[0], f1.shape[1]
    cols = []
    for dy in range(2 * md + 1):
        for dx in range(2 * md + 1):
            f2d = f2p_ref[0, dy:dy + H, dx:dx + W, :]              # (H, W, C)
            cols.append(jnp.sum(f1 * f2d, axis=-1, keepdims=True) * inv_c)
    cv = jnp.concatenate(cols, axis=-1)       # (H, W, D)
    o_ref[0] = _leaky(cv)


def correlation(f1, f2, md=1):
    N, H, W, C = f1.shape
    D = (2 * md + 1) ** 2
    f2p = jnp.pad(f2.astype(jnp.float32), ((0, 0), (md, md), (md, md), (0, 0)))
    return pl.pallas_call(
        functools.partial(_corr_kernel, md=md, inv_c=1.0 / C),
        out_shape=jax.ShapeDtypeStruct((N, H, W, D), jnp.float32),
        grid=(N,),
        in_specs=[
            pl.BlockSpec((1, H, W, C), lambda n: (n, 0, 0, 0)),
            pl.BlockSpec((1, H + 2 * md, W + 2 * md, C), lambda n: (n, 0, 0, 0)),
        ],
        out_specs=pl.BlockSpec((1, H, W, D), lambda n: (n, 0, 0, 0)),
        compiler_params=pltpu.CompilerParams(dimension_semantics=("parallel",)),
    )(f1.astype(jnp.float32), f2p)


# ----------------------------------------------------------------------------
# Bilinear warping at absolute pixel coords: true gather + lerp (no dense matrix)
# ----------------------------------------------------------------------------
def _grid_sample_kernel(idx_ref, w_ref, img_ref, o_ref, *, rows_per_chunk):
    # idx_ref: SMEM int32 (scalar prefetch), flat layout (N, n_chunks*TCH, 4)
    # w_ref:   (1, TCH, 4) f32 corner weights (validity folded in)
    # img_ref: (1, HW_in, C) f32 flattened source image
    # o_ref:   (1, TCH, C) f32
    n = pl.program_id(0)
    ch = pl.program_id(1)
    n_chunks = pl.num_programs(1)
    base = (n * n_chunks + ch) * rows_per_chunk * 4

    def body(i, carry):
        b = base + i * 4
        wrow = w_ref[0, pl.ds(i, 1), :]                             # (1, 4)
        acc = wrow[:, 0:1] * img_ref[0, pl.ds(idx_ref[b], 1), :]
        acc = acc + wrow[:, 1:2] * img_ref[0, pl.ds(idx_ref[b + 1], 1), :]
        acc = acc + wrow[:, 2:3] * img_ref[0, pl.ds(idx_ref[b + 2], 1), :]
        acc = acc + wrow[:, 3:4] * img_ref[0, pl.ds(idx_ref[b + 3], 1), :]
        o_ref[0, pl.ds(i, 1), :] = acc
        return carry

    lax.fori_loop(0, rows_per_chunk, body, 0)


def abs_grid_sample(img, grid):
    """img (N,H,W,C), grid (N,H,W,2) absolute pixel coords (x,y).  Bilinear, zero
    padding outside — equivalent to the reference abs_grid_sample."""
    N, H, W, C = img.shape
    HW = H * W
    g = grid.astype(jnp.float32)
    x = g[..., 0].reshape(N, HW)
    y = g[..., 1].reshape(N, HW)
    x0f = jnp.floor(x)
    y0f = jnp.floor(y)
    wx = x - x0f
    wy = y - y0f
    x0 = x0f.astype(jnp.int32)
    y0 = y0f.astype(jnp.int32)

    idx_list, w_list = [], []
    for dy in (0, 1):
        for dx in (0, 1):
            xc = x0 + dx
            yc = y0 + dy
            wgt = (wx if dx else 1.0 - wx) * (wy if dy else 1.0 - wy)
            valid = (xc >= 0) & (xc <= W - 1) & (yc >= 0) & (yc <= H - 1)
            idx_list.append(jnp.clip(yc, 0, H - 1) * W + jnp.clip(xc, 0, W - 1))
            w_list.append(jnp.where(valid, wgt, 0.0))
    idx4 = jnp.stack(idx_list, axis=-1).astype(jnp.int32)      # (N, HW, 4)
    w4 = jnp.stack(w_list, axis=-1).astype(jnp.float32)        # (N, HW, 4)

    TCH = HW if HW <= 512 else 512
    n_chunks = (HW + TCH - 1) // TCH
    HWp = n_chunks * TCH
    if HWp != HW:
        pad = HWp - HW
        idx4 = jnp.pad(idx4, ((0, 0), (0, pad), (0, 0)))
        w4 = jnp.pad(w4, ((0, 0), (0, pad), (0, 0)))
    idx_flat = idx4.reshape(-1)

    out = pl.pallas_call(
        functools.partial(_grid_sample_kernel, rows_per_chunk=TCH),
        out_shape=jax.ShapeDtypeStruct((N, HWp, C), jnp.float32),
        grid_spec=pltpu.PrefetchScalarGridSpec(
            num_scalar_prefetch=1,
            grid=(N, n_chunks),
            in_specs=[
                pl.BlockSpec((1, TCH, 4), lambda n, c, idx: (n, c, 0)),
                pl.BlockSpec((1, HW, C), lambda n, c, idx: (n, 0, 0)),
            ],
            out_specs=pl.BlockSpec((1, TCH, C), lambda n, c, idx: (n, c, 0)),
        ),
        compiler_params=pltpu.CompilerParams(
            dimension_semantics=("parallel", "parallel")),
    )(idx_flat, w4, img.reshape(N, HW, C).astype(jnp.float32))
    return out[:, :HW].reshape(N, H, W, C)


# ----------------------------------------------------------------------------
# Bilinear resize (align_corners=False) as two separable Pallas GEMMs (f32)
# ----------------------------------------------------------------------------
def _interp_matrix(n_out, n_in):
    pos = (jnp.arange(n_out, dtype=jnp.float32) + 0.5) * (n_in / n_out) - 0.5
    pos = jnp.clip(pos, 0.0, float(n_in - 1))
    p0 = jnp.floor(pos).astype(jnp.int32)
    p1 = jnp.minimum(p0 + 1, n_in - 1)
    w1 = pos - p0.astype(jnp.float32)
    w0 = 1.0 - w1
    return (w0[:, None] * jax.nn.one_hot(p0, n_in, dtype=jnp.float32)
            + w1[:, None] * jax.nn.one_hot(p1, n_in, dtype=jnp.float32))


def bilinear_resize_nhwc(x, Hout, Wout):
    # TODO(synk): for large outputs replace the dense interp matrices with a 2-tap
    #             gather+lerp kernel (only 2 nonzeros per row); tensors here are tiny.
    N, Hin, Win, C = x.shape
    Rh = _interp_matrix(Hout, Hin)
    Rw = _interp_matrix(Wout, Win)
    xb = jnp.transpose(x.astype(jnp.float32), (1, 0, 2, 3)).reshape(Hin, N * Win * C)
    t = pallas_gemm(Rh, xb, compute_dtype=jnp.float32).reshape(Hout, N, Win, C)
    tb = jnp.transpose(t, (2, 1, 0, 3)).reshape(Win, N * Hout * C)
    y = pallas_gemm(Rw, tb, compute_dtype=jnp.float32).reshape(Wout, N, Hout, C)
    return jnp.transpose(y, (1, 2, 0, 3))


def coord_grid(start, size, dtype):
    y0, x0 = start
    H, W = size
    yy, xx = jnp.meshgrid(jnp.arange(H) + y0, jnp.arange(W) + x0, indexing="ij")
    return jnp.stack([xx, yy], axis=-1).astype(dtype)


# ----------------------------------------------------------------------------
# PWC-style encoder / decoder (synthetic deterministic weights)
# ----------------------------------------------------------------------------
def init_params(key):
    specs = {
        "enc1a": (3, 3, 3, 8),   "enc1b": (3, 3, 8, 8),
        "enc2a": (3, 3, 8, 16),  "enc2b": (3, 3, 16, 16),
        "enc3a": (3, 3, 16, 16), "enc3b": (3, 3, 16, 16),
        "dec3_conv": (3, 3, 9 + 16, 16),     "dec3_pred": (3, 3, 16, 2),
        "dec2_conv": (3, 3, 9 + 16 + 2, 16), "dec2_pred": (3, 3, 16, 2),
    }
    params = {}
    names = sorted(specs)
    keys = jax.random.split(key, len(names))
    for k_, name in zip(keys, names):
        shape = specs[name]
        params[name] = {
            "w": 0.05 * jax.random.normal(k_, shape, jnp.float32),
            "b": jnp.zeros((shape[-1],), jnp.float32),
        }
    return params


def encoder(x, P):
    """3-level feature pyramid (stride 2 per level), LeakyReLU(0.1)."""
    x1 = conv2d_s1(conv2d_s2(x, P["enc1a"]["w"], P["enc1a"]["b"]),
                   P["enc1b"]["w"], P["enc1b"]["b"])
    x2 = conv2d_s1(conv2d_s2(x1, P["enc2a"]["w"], P["enc2a"]["b"]),
                   P["enc2b"]["w"], P["enc2b"]["b"])
    x3 = conv2d_s1(conv2d_s2(x2, P["enc3a"]["w"], P["enc3a"]["b"]),
                   P["enc3b"]["w"], P["enc3b"]["b"])
    return {"level1": x1, "level2": x2, "level3": x3}


def decoder(feat1, feat2, P):
    """Coarse-to-fine PWC decoder: corr -> convs -> flow, warp at finer level."""
    corr3 = correlation(feat1["level3"], feat2["level3"], md=1)
    x = jnp.concatenate([corr3, feat1["level3"]], axis=-1)
    x = conv2d_s1(x, P["dec3_conv"]["w"], P["dec3_conv"]["b"])
    flow3 = conv2d_s1(x, P["dec3_pred"]["w"], P["dec3_pred"]["b"], act=False)

    H2, W2 = feat1["level2"].shape[1:3]
    up_flow = bilinear_resize_nhwc(flow3, H2, W2) * 2.0
    cg2 = coord_grid((0, 0), (H2, W2), jnp.float32)
    f2_2w = abs_grid_sample(feat2["level2"], cg2[None] + up_flow)
    corr2 = correlation(feat1["level2"], f2_2w, md=1)
    x = jnp.concatenate([corr2, feat1["level2"], up_flow], axis=-1)
    x = conv2d_s1(x, P["dec2_conv"]["w"], P["dec2_conv"]["b"])
    flow2 = conv2d_s1(x, P["dec2_pred"]["w"], P["dec2_pred"]["b"], act=False)

    return {"level3": flow3, "level2": flow2}


def pwcnet_forward(data, P):
    imgs = data["imgs"]
    ab, fo = imgs["ab"], imgs["fo"]                  # NCHW, like PyTorch
    N = ab.shape[0]
    H, W = ab.shape[-2:]
    ab_n = jnp.transpose(ab, (0, 2, 3, 1)).astype(jnp.float32)   # -> NHWC
    fo_n = jnp.transpose(fo, (0, 2, 3, 1)).astype(jnp.float32)

    # both encoders in one batched pass (packs M for the conv GEMMs)
    feats = encoder(jnp.concatenate([ab_n, fo_n], axis=0), P)
    feat1 = {k: v[:N] for k, v in feats.items()}
    feat2 = {k: v[N:] for k, v in feats.items()}

    flow_pred = decoder(feat1, feat2, P)

    # 'flow_tf' not in imgs -> zero loss branch of the reference module
    data["losses"]["flow"] = jnp.float32(0.0)

    flow_result = flow_pred[END_LEVEL] * FLOW_DIV                 # (N, H2, W2, 2)
    flow_result = bilinear_resize_nhwc(flow_result, H, W)         # (N, H, W, 2)
    data["imgs"]["flow_tf_pred"] = jnp.transpose(flow_result, (0, 3, 1, 2))  # NCHW

    grid = coord_grid((0, 0), (H, W), flow_result.dtype)[None] + flow_result
    warped = abs_grid_sample(fo_n, grid)                          # NHWC
    data["imgs"]["fo"] = jnp.transpose(warped, (0, 3, 1, 2))      # NCHW
    return data


# ----------------------------------------------------------------------------
if __name__ == "__main__":
    key = jax.random.PRNGKey(0)
    k_ab, k_fo = jax.random.split(key)
    N, C, H, W = 2, 3, 16, 16
    ab = jax.random.normal(k_ab, (N, C, H, W), jnp.float32)
    fo = jax.random.normal(k_fo, (N, C, H, W), jnp.float32)

    params = init_params(jax.random.PRNGKey(42))
    data = {"imgs": {"ab": ab, "fo": fo}, "losses": {}}

    out = pwcnet_forward(data, params)
    jax.block_until_ready(out["imgs"]["fo"])
    jax.block_until_ready(out["imgs"]["flow_tf_pred"])
    jax.block_until_ready(out["losses"]["flow"])

    assert out["imgs"]["flow_tf_pred"].shape == (N, 2, H, W)
    assert out["imgs"]["fo"].shape == (N, C, H, W)
    print("KERNEL_OK")
</pallas_src>

<mosaic_0001>
module attributes {stable_mosaic.version = 11 : i64} {
  func.func @_gemm_kernel(%arg0: i32, %arg1: memref<256x27xbf16, #tpu.memory_space<vmem>>, %arg2: memref<27x8xbf16, #tpu.memory_space<vmem>>, %arg3: memref<1x8xf32, #tpu.memory_space<vmem>>, %arg4: memref<256x8xf32, #tpu.memory_space<vmem>>) attributes {dimension_semantics = [#tpu.dimension_semantics<parallel>], iteration_bounds = array<i64: 1>, scalar_prefetch = 0 : i64, scratch_operands = 0 : i64, tpu.core_type = #tpu.core_type<tc>, window_params = [{transform_indices = @transform_0, window_bounds = array<i64: 256, 27>}, {pipeline_mode = #tpu.pipeline_mode<synchronous>, transform_indices = @transform_1, window_bounds = array<i64: 27, 8>}, {pipeline_mode = #tpu.pipeline_mode<synchronous>, transform_indices = @transform_2, window_bounds = array<i64: 1, 8>}, {transform_indices = @transform_3, window_bounds = array<i64: 256, 8>}]} {
    %c0 = arith.constant 0 : index
    %c0_0 = arith.constant 0 : index
    %0 = vector.load %arg1[%c0, %c0_0] : memref<256x27xbf16, #tpu.memory_space<vmem>>, vector<256x27xbf16>
    %c0_1 = arith.constant 0 : index
    %c0_2 = arith.constant 0 : index
    %1 = vector.load %arg2[%c0_1, %c0_2] : memref<27x8xbf16, #tpu.memory_space<vmem>>, vector<27x8xbf16>
    %cst = arith.constant dense<0.000000e+00> : vector<256x8xf32>
    %2 = tpu.matmul %0, %1, %cst {dimension_numbers = #tpu.dot_dimension_numbers<[1], [0], [0], [1], [0, 0, 1, 1], [], []>} : vector<256x27xbf16>, vector<27x8xbf16>, vector<256x8xf32> -> vector<256x8xf32>
    %c0_3 = arith.constant 0 : index
    %c0_4 = arith.constant 0 : index
    %3 = vector.load %arg3[%c0_3, %c0_4] : memref<1x8xf32, #tpu.memory_space<vmem>>, vector<1x8xf32>
    %4 = vector.broadcast %3 : vector<1x8xf32> to vector<256x8xf32>
    %5 = arith.addf %2, %4 : vector<256x8xf32>
    %cst_5 = arith.constant 0.000000e+00 : f32
    %6 = vector.broadcast %cst_5 : f32 to vector<256x8xf32>
    %7 = arith.cmpf oge, %5, %6 : vector<256x8xf32>
    %cst_6 = arith.constant 1.000000e-01 : f32
    %8 = vector.broadcast %cst_6 : f32 to vector<256x8xf32>
    %9 = arith.mulf %8, %5 : vector<256x8xf32>
    %10 = arith.select %7, %5, %9 : vector<256x8xi1>, vector<256x8xf32>
    %c0_7 = arith.constant 0 : index
    %c0_8 = arith.constant 0 : index
    %11 = vector.load %arg4[%c0_7, %c0_8] : memref<256x8xf32, #tpu.memory_space<vmem>>, vector<256x8xf32>
    tpu.vector_store %arg4[%c0_7, %c0_8], %10 {strides = array<i32>} : memref<256x8xf32, #tpu.memory_space<vmem>>, vector<256x8xf32>,
    return
  }
  func.func @transform_0(%arg0: i32) -> (i32, i32) {
    %c0_i32 = arith.constant 0 : i32
    %c0_i32_0 = arith.constant 0 : i32
    return %arg0, %c0_i32 : i32, i32
  }
  func.func @transform_1(%arg0: i32) -> (i32, i32) {
    %c0_i32 = arith.constant 0 : i32
    %c0_i32_0 = arith.constant 0 : i32
    %c0_i32_1 = arith.constant 0 : i32
    return %c0_i32, %c0_i32_0 : i32, i32
  }
  func.func @transform_2(%arg0: i32) -> (i32, i32) {
    %c0_i32 = arith.constant 0 : i32
    %c0_i32_0 = arith.constant 0 : i32
    %c0_i32_1 = arith.constant 0 : i32
    return %c0_i32, %c0_i32_0 : i32, i32
  }
  func.func @transform_3(%arg0: i32) -> (i32, i32) {
    %c0_i32 = arith.constant 0 : i32
    %c0_i32_0 = arith.constant 0 : i32
    return %arg0, %c0_i32 : i32, i32
  }
}

</mosaic_0001>

<bundles_post_ra>
// kernel: tpu_custom_call.1
= control target key start
LH: loop header
LB: loop body
LE: loop exit
PB: predicated region body
PF: predicated region fallthrough
CT: control target
= control target key end

     0   :  { %vm198_vm0 = vcmask 1044480   ;;  %vm199_vm1 = vcmask 1045504   ;;  %vm149_vm2 = vcmask 220160   ;;  %v611_v1 = vmov 65535   ;;  %s867_s1 = inlined_call_operand.vmem [shape: bf16[27,8], index: 1, kind: input, shape index: {}]   ;;  %s868_s0 = inlined_call_operand.vmem [shape: bf16[256,27], index: 0, kind: input, shape index: {}]   ;;  %s869_s2 = inlined_call_operand.vmem [shape: f32[1,8], index: 2, kind: input, shape index: {}]   ;;  %s870_s3 = inlined_call_operand.vmem [shape: f32[256,8], index: 3, kind: output, shape index: {}]  }
   0x1   :  { %v593_v0 = vld [vmem:[%s867_s1] sm:$0xff]   ;;  %v200_v2 = vsel %vm198_vm0, 4294967295, %v611_v1  ;;  %v594_v3 = vld [vmem:[%s867_s1 + $0x8] sm:$0x3f]   ;;  %v599_v10 = vld [vmem:[%s868_s0 + $0x10] sm:$0xff]   ;;  %vm462_vm3 = vcmask 64512  }
   0x2   :  { %552 = vmatprep.subr.bf16.mxu0 %v593_v0  ;;  %588 = vmatprep.subr.bf16.mxu1 %v593_v0  ;;  %v201_v4 = vsel %vm199_vm1, %v200_v2, 0  ;;  %v595_v5 = vld [vmem:[%s868_s0] sm:$0xff]   ;;  %v597_v8 = vld [vmem:[%s868_s0 + $0x8] sm:$0xff]   ;;  %v600_v11 = vld [vmem:[%s868_s0 + $0x50] sm:$0xff]  }
   0x3   :  { %553 = vmatpush3.bf16.msra.mxu0 %v593_v0  ;;  %590 = vmatpush3.bf16.msra.mxu1 %v593_v0  ;;  %v203_v6 = vand.u32 %v594_v3, %v201_v4  ;;  %v596_v7 = vld [vmem:[%s868_s0 + $0x40] sm:$0xff]   ;;  %v598_v9 = vld [vmem:[%s868_s0 + $0x48] sm:$0xff]   ;;  %v601_v12 = vld [vmem:[%s868_s0 + $0x18] sm:$0xff]  }
   0x4   :  { %556 = vmatprep.mubr.msk.bf16.mxu0 %vm149_vm2, %v595_v5  ;;  %572 = vmatprep.mubr.msk.bf16.mxu1 %vm149_vm2, %v596_v7  ;;  %v602_v13 = vld [vmem:[%s868_s0 + $0x58] sm:$0xff]   ;;  %v603_v14 = vld [vmem:[%s868_s0 + $0x20] sm:$0xff]   ;;  %v605_v16 = vld [vmem:[%s868_s0 + $0x28] sm:$0xff]  }
   0x5   :  { %554 = vmatprep.subr.bf16.mxu0 %v203_v6  ;;  %589 = vmatprep.subr.bf16.mxu1 %v203_v6  ;;  %v604_v15 = vld [vmem:[%s868_s0 + $0x60] sm:$0xff]   ;;  %v606_v17 = vld [vmem:[%s868_s0 + $0x68] sm:$0xff]   ;;  %v607_v18 = vld [vmem:[%s868_s0 + $0x30] sm:$0xff]  }
   0x6   :  { %v608_v19 = vld [vmem:[%s868_s0 + $0x70] sm:$0xff]   ;;  %v609_v20 = vld [vmem:[%s868_s0 + $0x38] sm:$0xff]   ;;  %v705_v22 = vld [vmem:[%s869_s2] ss:$0 sm:$0xff] }
   0x7   :  { %555 = vmatpush3.bf16.msra.mxu0 %v203_v6  ;;  %591 = vmatpush3.bf16.msra.mxu1 %v203_v6  ;;  %v610_v21 = vld [vmem:[%s868_s0 + $0x78] sm:$0xff]  }
   0xa   :  { %557 = vmatmul.mubr.msk.bf16.vlgmr.msra.gmra.mrb[0].mxu0 %vm149_vm2, %v597_v8  ;;  %573 = vmatmul.mubr.msk.bf16.vlgmr.msra.gmra.mrb[0].mxu1 %vm149_vm2, %v598_v9 }
   0xb   :  { %560 = vmatprep.mubr.msk.bf16.mxu0 %vm149_vm2, %v599_v10  ;;  %576 = vmatprep.mubr.msk.bf16.mxu1 %vm149_vm2, %v600_v11 }
  0x12   :  { %561 = vmatmul.mubr.msk.bf16.gmra.mrb[4].mxu0 %vm149_vm2, %v601_v12  ;;  %577 = vmatmul.mubr.msk.bf16.gmra.mrb[4].mxu1 %vm149_vm2, %v602_v13 }
  0x13   :  { %564 = vmatprep.mubr.msk.bf16.mxu0 %vm149_vm2, %v603_v14  ;;  %580 = vmatprep.mubr.msk.bf16.mxu1 %vm149_vm2, %v604_v15 }
  0x1a   :  { %565 = vmatmul.mubr.msk.bf16.gmra.mrb[8].mxu0 %vm149_vm2, %v605_v16  ;;  %581 = vmatmul.mubr.msk.bf16.gmra.mrb[8].mxu1 %vm149_vm2, %v606_v17 }
  0x1b   :  { %568 = vmatprep.mubr.msk.bf16.mxu0 %vm149_vm2, %v607_v18  ;;  %584 = vmatprep.mubr.msk.bf16.mxu1 %vm149_vm2, %v608_v19 }
  0x22   :  { %569 = vmatmul.mubr.msk.bf16.gmra.mrb[12].mxu0 %vm149_vm2, %v609_v20  ;;  %585 = vmatmul.mubr.msk.bf16.gmra.mrb[12].mxu1 %vm149_vm2, %v610_v21 }
  0xdd   :  { %v558_v23 = vpop.f32.mrb[0].mxu0  ;;  %v574_v24 = vpop.f32.mrb[0].mxu1 }
  0xde   :  { %v248_v25 = vadd.f32 %v558_v23, %v705_v22  ;;  %v312_v26 = vadd.f32 %v574_v24, %v705_v22  ;;  %v239_v27 = vpop.f32.mrb[1].mxu0  ;;  %v303_v28 = vpop.f32.mrb[1].mxu1 }
  0xdf   :  { %v240_v29 = vadd.f32 %v705_v22, %v239_v27  ;;  %v304_v30 = vadd.f32 %v705_v22, %v303_v28  ;;  %v559_v31 = vpop.f32.mrb[2].mxu0  ;;  %v575_v32 = vpop.f32.mrb[2].mxu1 }
  0xe0   :  { %vm368_vm4 = vcmp.ge.f32.partialorder %v248_v25, 0.0  ;;  %v400_v33 = vmul.f32 0.1, %v248_v25  ;;  %vm384_vm5 = vcmp.ge.f32.partialorder %v312_v26, 0.0  ;;  %v416_v34 = vmul.f32 0.1, %v312_v26 }
  0xe1   :  { %vm366_vm6 = vcmp.ge.f32.partialorder %v240_v29, 0.0  ;;  %v398_v35 = vmul.f32 0.1, %v240_v29  ;;  %vm382_vm7 = vcmp.ge.f32.partialorder %v304_v30, 0.0  ;;  %v414_v36 = vmul.f32 0.1, %v304_v30 }
  0xe2   :  { %v432_v37 = vsel %vm368_vm4, %v248_v25, %v400_v33  ;;  %v448_v38 = vsel %vm384_vm5, %v312_v26, %v416_v34  ;;  %v251_v39 = vadd.f32 %v559_v31, %v705_v22  ;;  %v315_v40 = vadd.f32 %v575_v32, %v705_v22  ;;  %v242_v41 = vpop.f32.mrb[3].mxu0  ;;  %v306_v42 = vpop.f32.mrb[3].mxu1 }
  0xe3   :  { %465 = vst.msk [vmem:[%s870_s3 + $0x10] sm:$0xff] %vm462_vm3, %v432_v37  ;;  %481 = vst.msk [vmem:[%s870_s3 + $0x90] sm:$0xff] %vm462_vm3, %v448_v38  ;;  %v430_v43 = vsel %vm366_vm6, %v240_v29, %v398_v35  ;;  %v446_v44 = vsel %vm382_vm7, %v304_v30, %v414_v36  ;;  %v243_v45 = vadd.f32 %v705_v22, %v242_v41 }
  0xe4   :  { %v307_v46 = vadd.f32 %v705_v22, %v306_v42  ;;  %463 = vst.msk [vmem:[%s870_s3] sm:$0xff] %vm462_vm3, %v430_v43  ;;  %479 = vst.msk [vmem:[%s870_s3 + $0x80] sm:$0xff] %vm462_vm3, %v446_v44  ;;  %vm369_vm8 = vcmp.ge.f32.partialorder %v251_v39, 0.0  ;;  %v401_v47 = vmul.f32 0.1, %v251_v39  ;;  %vm385_vm9 = vcmp.ge.f32.partialorder %v315_v40, 0.0 }
  0xe5   :  { %v417_v48 = vmul.f32 0.1, %v315_v40  ;;  %vm367_vm10 = vcmp.ge.f32.partialorder %v243_v45, 0.0  ;;  %v399_v49 = vmul.f32 0.1, %v243_v45  ;;  %v562_v53 = vpop.f32.mrb[4].mxu0 }
  0xe6   :  { %vm383_vm11 = vcmp.ge.f32.partialorder %v307_v46, 0.0  ;;  %v415_v50 = vmul.f32 0.1, %v307_v46  ;;  %v433_v51 = vsel %vm369_vm8, %v251_v39, %v401_v47  ;;  %v578_v54 = vpop.f32.mrb[4].mxu1  ;;  %v264_v57 = vadd.f32 %v562_v53, %v705_v22  ;;  %v255_v59 = vpop.f32.mrb[5].mxu0 }
  0xe7   :  { %v449_v52 = vsel %vm385_vm9, %v315_v40, %v417_v48  ;;  %466 = vst.msk [vmem:[%s870_s3 + $0x18] sm:$0xff] %vm462_vm3, %v433_v51  ;;  %v431_v55 = vsel %vm367_vm10, %v243_v45, %v399_v49  ;;  %v328_v58 = vadd.f32 %v578_v54, %v705_v22  ;;  %v319_v60 = vpop.f32.mrb[5].mxu1  ;;  %v256_v61 = vadd.f32 %v705_v22, %v255_v59  ;;  %v563_v63 = vpop.f32.mrb[6].mxu0 }
  0xe8   :  { %482 = vst.msk [vmem:[%s870_s3 + $0x98] sm:$0xff] %vm462_vm3, %v449_v52  ;;  %v447_v56 = vsel %vm383_vm11, %v307_v46, %v415_v50  ;;  %464 = vst.msk [vmem:[%s870_s3 + $0x8] sm:$0xff] %vm462_vm3, %v431_v55  ;;  %v320_v62 = vadd.f32 %v705_v22, %v319_v60  ;;  %v579_v0 = vpop.f32.mrb[6].mxu1  ;;  %vm372_vm12 = vcmp.ge.f32.partialorder %v264_v57, 0.0  ;;  %v404_v1 = vmul.f32 0.1, %v264_v57 }
  0xe9   :  { %480 = vst.msk [vmem:[%s870_s3 + $0x88] sm:$0xff] %vm462_vm3, %v447_v56  ;;  %vm388_vm13 = vcmp.ge.f32.partialorder %v328_v58, 0.0  ;;  %v420_v2 = vmul.f32 0.1, %v328_v58  ;;  %vm370_vm14 = vcmp.ge.f32.partialorder %v256_v61, 0.0  ;;  %v267_v7 = vadd.f32 %v563_v63, %v705_v22  ;;  %v258_v9 = vpop.f32.mrb[7].mxu0 }
  0xea   :  { %v402_v3 = vmul.f32 0.1, %v256_v61  ;;  %vm386_vm15 = vcmp.ge.f32.partialorder %v320_v62, 0.0  ;;  %v418_v4 = vmul.f32 0.1, %v320_v62  ;;  %v436_v5 = vsel %vm372_vm12, %v264_v57, %v404_v1  ;;  %v322_v10 = vpop.f32.mrb[7].mxu1 }
  0xeb   :  { %v452_v6 = vsel %vm388_vm13, %v328_v58, %v420_v2  ;;  %v331_v8 = vadd.f32 %v579_v0, %v705_v22  ;;  %469 = vst.msk [vmem:[%s870_s3 + $0x30] sm:$0xff] %vm462_vm3, %v436_v5  ;;  %v259_v13 = vadd.f32 %v705_v22, %v258_v9  ;;  %v323_v14 = vadd.f32 %v705_v22, %v322_v10 }
  0xec   :  { %485 = vst.msk [vmem:[%s870_s3 + $0xb0] sm:$0xff] %vm462_vm3, %v452_v6  ;;  %v434_v11 = vsel %vm370_vm14, %v256_v61, %v402_v3  ;;  %v450_v12 = vsel %vm386_vm15, %v320_v62, %v418_v4  ;;  %vm373_vm0 = vcmp.ge.f32.partialorder %v267_v7, 0.0  ;;  %v405_v15 = vmul.f32 0.1, %v267_v7 }
  0xed   :  { %467 = vst.msk [vmem:[%s870_s3 + $0x20] sm:$0xff] %vm462_vm3, %v434_v11  ;;  %483 = vst.msk [vmem:[%s870_s3 + $0xa0] sm:$0xff] %vm462_vm3, %v450_v12  ;;  %vm389_vm1 = vcmp.ge.f32.partialorder %v331_v8, 0.0  ;;  %v421_v16 = vmul.f32 0.1, %v331_v8  ;;  %vm371_vm2 = vcmp.ge.f32.partialorder %v259_v13, 0.0 }
  0xee   :  { %v403_v17 = vmul.f32 0.1, %v259_v13  ;;  %vm387_vm4 = vcmp.ge.f32.partialorder %v323_v14, 0.0  ;;  %v419_v18 = vmul.f32 0.1, %v323_v14  ;;  %v437_v19 = vsel %vm373_vm0, %v267_v7, %v405_v15  ;;  %v566_v21 = vpop.f32.mrb[8].mxu0 }
  0xef   :  { %v453_v20 = vsel %vm389_vm1, %v331_v8, %v421_v16  ;;  %v582_v23 = vpop.f32.mrb[8].mxu1  ;;  %470 = vst.msk [vmem:[%s870_s3 + $0x38] sm:$0xff] %vm462_vm3, %v437_v19  ;;  %v280_v26 = vadd.f32 %v566_v21, %v705_v22  ;;  %v271_v28 = vpop.f32.mrb[9].mxu0 }
  0xf0   :  { %486 = vst.msk [vmem:[%s870_s3 + $0xb8] sm:$0xff] %vm462_vm3, %v453_v20  ;;  %v435_v24 = vsel %vm371_vm2, %v259_v13, %v403_v17  ;;  %v451_v25 = vsel %vm387_vm4, %v323_v14, %v419_v18  ;;  %v344_v27 = vadd.f32 %v582_v23, %v705_v22  ;;  %v335_v29 = vpop.f32.mrb[9].mxu1  ;;  %v272_v30 = vadd.f32 %v705_v22, %v271_v28  ;;  %v567_v32 = vpop.f32.mrb[10].mxu0 }
  0xf1   :  { %468 = vst.msk [vmem:[%s870_s3 + $0x28] sm:$0xff] %vm462_vm3, %v435_v24  ;;  %484 = vst.msk [vmem:[%s870_s3 + $0xa8] sm:$0xff] %vm462_vm3, %v451_v25  ;;  %v336_v31 = vadd.f32 %v705_v22, %v335_v29  ;;  %v583_v33 = vpop.f32.mrb[10].mxu1  ;;  %vm376_vm5 = vcmp.ge.f32.partialorder %v280_v26, 0.0  ;;  %v408_v34 = vmul.f32 0.1, %v280_v26  ;;  %v283_v40 = vadd.f32 %v567_v32, %v705_v22 }
  0xf2   :  { %vm392_vm6 = vcmp.ge.f32.partialorder %v344_v27, 0.0  ;;  %v424_v35 = vmul.f32 0.1, %v344_v27  ;;  %vm374_vm7 = vcmp.ge.f32.partialorder %v272_v30, 0.0  ;;  %v406_v36 = vmul.f32 0.1, %v272_v30 }
  0xf3   :  { %vm390_vm8 = vcmp.ge.f32.partialorder %v336_v31, 0.0  ;;  %v422_v37 = vmul.f32 0.1, %v336_v31  ;;  %v440_v38 = vsel %vm376_vm5, %v280_v26, %v408_v34  ;;  %v347_v41 = vadd.f32 %v583_v33, %v705_v22  ;;  %v274_v42 = vpop.f32.mrb[11].mxu0  ;;  %v338_v43 = vpop.f32.mrb[11].mxu1 }
  0xf4   :  { %v456_v39 = vsel %vm392_vm6, %v344_v27, %v424_v35  ;;  %473 = vst.msk [vmem:[%s870_s3 + $0x50] sm:$0xff] %vm462_vm3, %v440_v38  ;;  %v438_v44 = vsel %vm374_vm7, %v272_v30, %v406_v36  ;;  %v275_v46 = vadd.f32 %v705_v22, %v274_v42  ;;  %v339_v47 = vadd.f32 %v705_v22, %v338_v43 }
  0xf5   :  { %489 = vst.msk [vmem:[%s870_s3 + $0xd0] sm:$0xff] %vm462_vm3, %v456_v39  ;;  %v454_v45 = vsel %vm390_vm8, %v336_v31, %v422_v37  ;;  %v570_v48 = vpop.f32.mrb[12].mxu0  ;;  %v586_v49 = vpop.f32.mrb[12].mxu1  ;;  %471 = vst.msk [vmem:[%s870_s3 + $0x40] sm:$0xff] %vm462_vm3, %v438_v44  ;;  %vm377_vm9 = vcmp.ge.f32.partialorder %v283_v40, 0.0  ;;  %vm393_vm10 = vcmp.ge.f32.partialorder %v347_v41, 0.0 }
  0xf6   :  { %487 = vst.msk [vmem:[%s870_s3 + $0xc0] sm:$0xff] %vm462_vm3, %v454_v45  ;;  %v409_v50 = vmul.f32 0.1, %v283_v40  ;;  %v425_v51 = vmul.f32 0.1, %v347_v41  ;;  %vm375_vm11 = vcmp.ge.f32.partialorder %v275_v46, 0.0  ;;  %v296_v56 = vadd.f32 %v570_v48, %v705_v22 }
  0xf7   :  { %v407_v52 = vmul.f32 0.1, %v275_v46  ;;  %vm391_vm12 = vcmp.ge.f32.partialorder %v339_v47, 0.0  ;;  %v423_v53 = vmul.f32 0.1, %v339_v47  ;;  %v360_v57 = vadd.f32 %v586_v49, %v705_v22  ;;  %v287_v58 = vpop.f32.mrb[13].mxu0 }
  0xf8   :  { %v441_v54 = vsel %vm377_vm9, %v283_v40, %v409_v50  ;;  %v457_v55 = vsel %vm393_vm10, %v347_v41, %v425_v51  ;;  %v351_v59 = vpop.f32.mrb[13].mxu1  ;;  %v288_v62 = vadd.f32 %v705_v22, %v287_v58  ;;  %v571_v0 = vpop.f32.mrb[14].mxu0  ;;  %vm380_vm13 = vcmp.ge.f32.partialorder %v296_v56, 0.0 }
  0xf9   :  { %474 = vst.msk [vmem:[%s870_s3 + $0x58] sm:$0xff] %vm462_vm3, %v441_v54  ;;  %490 = vst.msk [vmem:[%s870_s3 + $0xd8] sm:$0xff] %vm462_vm3, %v457_v55  ;;  %v439_v60 = vsel %vm375_vm11, %v275_v46, %v407_v52  ;;  %v455_v61 = vsel %vm391_vm12, %v339_v47, %v423_v53  ;;  %v352_v63 = vadd.f32 %v705_v22, %v351_v59  ;;  %v587_v1 = vpop.f32.mrb[14].mxu1  ;;  %v412_v2 = vmul.f32 0.1, %v296_v56  ;;  %v290_v10 = vpop.f32.mrb[15].mxu0 }
  0xfa   :  { %472 = vst.msk [vmem:[%s870_s3 + $0x48] sm:$0xff] %vm462_vm3, %v439_v60  ;;  %488 = vst.msk [vmem:[%s870_s3 + $0xc8] sm:$0xff] %vm462_vm3, %v455_v61  ;;  %vm396_vm14 = vcmp.ge.f32.partialorder %v360_v57, 0.0  ;;  %v428_v3 = vmul.f32 0.1, %v360_v57  ;;  %vm378_vm15 = vcmp.ge.f32.partialorder %v288_v62, 0.0  ;;  %v299_v8 = vadd.f32 %v571_v0, %v705_v22 }
  0xfb   :  { %v410_v4 = vmul.f32 0.1, %v288_v62  ;;  %vm394_vm0 = vcmp.ge.f32.partialorder %v352_v63, 0.0  ;;  %v426_v5 = vmul.f32 0.1, %v352_v63  ;;  %v444_v6 = vsel %vm380_vm13, %v296_v56, %v412_v2  ;;  %v354_v11 = vpop.f32.mrb[15].mxu1 }
  0xfc   :  { %v460_v7 = vsel %vm396_vm14, %v360_v57, %v428_v3  ;;  %v363_v9 = vadd.f32 %v587_v1, %v705_v22  ;;  %477 = vst.msk [vmem:[%s870_s3 + $0x70] sm:$0xff] %vm462_vm3, %v444_v6  ;;  %v291_v14 = vadd.f32 %v705_v22, %v290_v10  ;;  %v355_v15 = vadd.f32 %v705_v22, %v354_v11 }
  0xfd   :  { %493 = vst.msk [vmem:[%s870_s3 + $0xf0] sm:$0xff] %vm462_vm3, %v460_v7  ;;  %v442_v12 = vsel %vm378_vm15, %v288_v62, %v410_v4  ;;  %v458_v13 = vsel %vm394_vm0, %v352_v63, %v426_v5  ;;  %vm381_vm1 = vcmp.ge.f32.partialorder %v299_v8, 0.0  ;;  %v413_v16 = vmul.f32 0.1, %v299_v8 }
  0xfe   :  { %475 = vst.msk [vmem:[%s870_s3 + $0x60] sm:$0xff] %vm462_vm3, %v442_v12  ;;  %491 = vst.msk [vmem:[%s870_s3 + $0xe0] sm:$0xff] %vm462_vm3, %v458_v13  ;;  %vm397_vm2 = vcmp.ge.f32.partialorder %v363_v9, 0.0  ;;  %v429_v17 = vmul.f32 0.1, %v363_v9  ;;  %vm379_vm4 = vcmp.ge.f32.partialorder %v291_v14, 0.0 }
  0xff   :  { %v411_v18 = vmul.f32 0.1, %v291_v14  ;;  %vm395_vm5 = vcmp.ge.f32.partialorder %v355_v15, 0.0  ;;  %v427_v19 = vmul.f32 0.1, %v355_v15  ;;  %v445_v20 = vsel %vm381_vm1, %v299_v8, %v413_v16 }
 0x100   :  { %v461_v22 = vsel %vm397_vm2, %v363_v9, %v429_v17  ;;  %478 = vst.msk [vmem:[%s870_s3 + $0x78] sm:$0xff] %vm462_vm3, %v445_v20 }
 0x101   :  { %494 = vst.msk [vmem:[%s870_s3 + $0xf8] sm:$0xff] %vm462_vm3, %v461_v22  ;;  %v443_v21 = vsel %vm379_vm4, %v291_v14, %v411_v18  ;;  %v459_v23 = vsel %vm395_vm5, %v355_v15, %v427_v19 }
 0x102   :  { %476 = vst.msk [vmem:[%s870_s3 + $0x68] sm:$0xff] %vm462_vm3, %v443_v21  ;;  %492 = vst.msk [vmem:[%s870_s3 + $0xe8] sm:$0xff] %vm462_vm3, %v459_v23 }

</bundles_post_ra>
